<compile_context>
chip_gen: v6e
topology: v6e:2x2x1
jax: 0.10.0
libtpu: 0.0.40
codegen_flags: <defaults>
</compile_context>

<pallas_src>
import jax
import jax.numpy as jnp
from jax.experimental import pallas as pl
from jax.experimental.pallas import tpu as pltpu


def _round_up(x, m):
    return ((x + m - 1) // m) * m


def _pick_batch_tiling(B, max_tb=2048):
    """Pick (TB, B_pad).

    TB is a multiple of 128 that evenly divides the 128-padded batch (so no
    extra padding waste beyond round_up(B, 128)), preferring >= 2 grid steps
    (ideally an even count) so v7x's second TensorCore gets work and the DMA
    pipeline has something to overlap, and otherwise the largest tile to
    amortize the ~0.35us per-grid-step overhead.
    """
    B128 = max(128, _round_up(B, 128))
    divisors = [tb for tb in range(128, min(max_tb, B128) + 1, 128)
                if B128 % tb == 0]
    multi = [tb for tb in divisors if B128 // tb >= 2]
    even = [tb for tb in multi if (B128 // tb) % 2 == 0]
    if even:
        return max(even), B128
    if multi:
        return max(multi), B128
    return max(divisors), B128


def _widedeep_kernel(xs_ref, xd_ref, xe_ref,
                     ws_ref, wd_ref, bw_ref,
                     w1e_ref, w1d_ref, b1_ref,
                     w2_ref, b2_ref,
                     wo_ref,
                     out_ref):
    """Fused wide branch + 2-layer deep MLP + sigmoid, feature-major form.

    Every activation tile is (features, TB) with the batch on the lane axis,
    so all matmuls are plain NN feeds w[out, in] @ x[in, TB] and the final
    (num_classes, TB) store is lane-dense.  Accumulation, biases, ReLU and
    sigmoid are f32; inter-layer activations go back to bf16 for the MXU.
    Dropout = inference identity.
    """
    def nn_dot(w, x):
        return jnp.dot(w, x, preferred_element_type=jnp.float32)

    # ---- wide branch: Linear + ReLU over [X_sparse | X_dense] --------------
    wide = nn_dot(ws_ref[...], xs_ref[...]) + nn_dot(wd_ref[...], xd_ref[...])
    wide = jnp.maximum(wide + bw_ref[...], 0.0)                      # (C, TB)

    # ---- deep branch: 2 x (Linear + ReLU) + bias-free output Linear --------
    h = nn_dot(w1e_ref[...], xe_ref[...]) + nn_dot(w1d_ref[...], xd_ref[...])
    h = jnp.maximum(h + b1_ref[...], 0.0).astype(jnp.bfloat16)       # (H1, TB)
    h = nn_dot(w2_ref[...], h) + b2_ref[...]
    h = jnp.maximum(h, 0.0).astype(jnp.bfloat16)                     # (H2, TB)
    dnn = nn_dot(wo_ref[...], h)                                     # (C, TB)

    # ---- combine + sigmoid (EUP), lane-dense f32 store ----------------------
    out_ref[...] = jax.nn.sigmoid(wide + dnn)


def widedeep_forward(X_sparse, X_dense, params):
    """Embedding gather in XLA glue; fused wide+deep MLP hot path in Pallas."""
    B, n_sparse = X_sparse.shape

    C, NSp = params["wide_w_sparse"].shape
    NDp = params["wide_w_dense"].shape[1]
    H1, NEp = params["dnn_w1_emb"].shape
    H2 = params["dnn_w2"].shape[0]

    # TODO(synk): fuse the embedding gather into the kernel (scalar-prefetch
    # X_sparse, emb_tables HBM-resident via memory_space=pl.ANY + manual DMA
    # row gather); kept in XLA glue for now but gathered straight into
    # feature-major bf16 so no extra concat/pad materialization follows.
    emb_t = jnp.concatenate(
        [jnp.take(tbl, X_sparse[:, i], axis=0).T                 # (emb, B)
         for i, tbl in enumerate(params["emb_tables"])], axis=0)  # (E, B)
    xs_t = X_sparse.T.astype(jnp.float32)   # (n_sparse, B); keep IDs exact in f32
    xd_t = X_dense.T.astype(jnp.bfloat16)   # (dense, B); shared by both branches

    TB, B_pad = _pick_batch_tiling(B)
    num_tiles = B_pad // TB

    def pad_fm(x, rows, dtype):
        """Zero-pad a feature-major (features, B) array to (rows, B_pad)."""
        out = jnp.zeros((rows, B_pad), dtype)
        return out.at[:x.shape[0], :x.shape[1]].set(x.astype(dtype))

    xs_p = pad_fm(xs_t, NSp, jnp.float32)
    xd_p = pad_fm(xd_t, NDp, jnp.bfloat16)
    xe_p = pad_fm(emb_t, NEp, jnp.bfloat16)

    # Activations stream in (features, TB) tiles, batch on the lane axis.
    act_spec = lambda rows: pl.BlockSpec((rows, TB), lambda i: (0, i))
    # Resident weights: constant index_map -> DMA'd once, reused every step.
    # TODO(synk): for production-size hidden dims, single-buffer these
    # (pipeline_mode=pl.Buffered(1) or a one-shot DMA into scratch) to halve
    # their VMEM footprint; negligible at these shapes.
    res_spec = lambda shp: pl.BlockSpec(shp, lambda i: (0, 0))

    weight_args = (params["wide_w_sparse"], params["wide_w_dense"],
                   params["wide_b"],
                   params["dnn_w1_emb"], params["dnn_w1_dense"],
                   params["dnn_b1"],
                   params["dnn_w2"], params["dnn_b2"],
                   params["dnn_out_w"])
    weight_bytes = sum(int(w.size) * w.dtype.itemsize for w in weight_args)

    act_tile_bytes = TB * (4 * NSp + 2 * NDp + 2 * NEp)
    out_tile_bytes = 4 * C * TB
    # double-buffered activation/output tiles + (currently double-buffered)
    # resident weights, 2x headroom + 4 MiB slack; floor 16 MiB, cap 64 MiB.
    vmem_need = 2 * (act_tile_bytes + out_tile_bytes) + 2 * weight_bytes
    vmem_limit = int(min(64 << 20, max(16 << 20, 2 * vmem_need + (4 << 20))))

    flops = 2 * B_pad * (C * (NSp + NDp) + H1 * (NEp + NDp) + H2 * H1 + C * H2)
    bytes_accessed = (num_tiles * (act_tile_bytes + out_tile_bytes)
                      + weight_bytes)

    out = pl.pallas_call(
        _widedeep_kernel,
        out_shape=jax.ShapeDtypeStruct((C, B_pad), jnp.float32),
        grid_spec=pltpu.PrefetchScalarGridSpec(
            num_scalar_prefetch=0,
            grid=(num_tiles,),
            in_specs=[
                act_spec(NSp),                 # sparse IDs      (NSp, TB) f32
                act_spec(NDp),                 # dense features  (NDp, TB) bf16
                act_spec(NEp),                 # embeddings      (NEp, TB) bf16
                res_spec((C, NSp)),            # wide W, sparse cols   f32
                res_spec((C, NDp)),            # wide W, dense cols    bf16
                res_spec((C, 1)),              # wide bias             f32
                res_spec((H1, NEp)),           # dnn L1 W, emb cols    bf16
                res_spec((H1, NDp)),           # dnn L1 W, dense cols  bf16
                res_spec((H1, 1)),             # dnn L1 bias           f32
                res_spec((H2, H1)),            # dnn L2 W              bf16
                res_spec((H2, 1)),             # dnn L2 bias           f32
                res_spec((C, H2)),             # dnn out W (no bias)   bf16
            ],
            # lane-dense output: batch on the lane axis, (C, TB) per grid step
            out_specs=pl.BlockSpec((C, TB), lambda i: (0, i)),
        ),
        compiler_params=pltpu.CompilerParams(
            dimension_semantics=("parallel",),      # 2-TC sharding on v7x
            vmem_limit_bytes=vmem_limit),
        cost_estimate=pl.CostEstimate(
            flops=flops,
            transcendentals=C * B_pad,              # sigmoid
            bytes_accessed=bytes_accessed),
    )(xs_p, xd_p, xe_p,
      params["wide_w_sparse"], params["wide_w_dense"], params["wide_b"],
      params["dnn_w1_emb"], params["dnn_w1_dense"], params["dnn_b1"],
      params["dnn_w2"], params["dnn_b2"],
      params["dnn_out_w"])

    probs = out[:, :B]                       # (C, B), drop batch padding
    return probs[0] if C == 1 else probs.T   # matches torch .squeeze(1)


def init_params(key, sparse_feature_columns, dense_feature_size,
                emb_size, hidden_dims, num_classes, init_std=1e-4):
    """Deterministic synthetic params mirroring the nn.Module's shapes.

    Linear weights keep torch's [out, in] layout, but the wide and dnn-layer-1
    weights are split column-wise to match the three separate activation
    streams (sparse IDs / dense features / embeddings), each column block
    zero-padded to its stream's sublane multiple (8 for f32, 16 for bf16).
    The sparse-ID columns of the wide weight stay f32 (IDs are kept exact);
    biases stay f32 as (out, 1) columns for row-form broadcast.
    """
    assert len(hidden_dims) == 2, "kernel is specialized to two hidden layers"
    assert dense_feature_size > 0
    n_sparse = len(sparse_feature_columns)
    E = emb_size * n_sparse
    H1, H2 = hidden_dims
    NSp = _round_up(n_sparse, 8)              # f32 sublane multiple
    NDp = _round_up(dense_feature_size, 16)   # bf16 sublane multiple
    NEp = _round_up(E, 16)

    keys = jax.random.split(key, n_sparse + 8)
    ki = iter(keys)

    emb_tables = [jax.random.normal(next(ki), (v, emb_size),
                                    jnp.float32).astype(jnp.bfloat16)
                  for v in sparse_feature_columns]

    def pad_cols(w, cols, dtype):
        wp = jnp.zeros((w.shape[0], cols), jnp.float32).at[:, :w.shape[1]].set(w)
        return wp.astype(dtype)

    wide_w = jax.random.normal(
        next(ki), (num_classes, n_sparse + dense_feature_size), jnp.float32) * 0.1
    wide_w_sparse = pad_cols(wide_w[:, :n_sparse], NSp, jnp.float32)
    wide_w_dense = pad_cols(wide_w[:, n_sparse:], NDp, jnp.bfloat16)
    wide_b = jax.random.normal(next(ki), (num_classes, 1), jnp.float32) * 0.1

    dnn_w1 = jax.random.normal(
        next(ki), (H1, E + dense_feature_size), jnp.float32) * init_std
    dnn_w1_emb = pad_cols(dnn_w1[:, :E], NEp, jnp.bfloat16)
    dnn_w1_dense = pad_cols(dnn_w1[:, E:], NDp, jnp.bfloat16)
    dnn_b1 = jax.random.normal(next(ki), (H1, 1), jnp.float32) * 0.01
    dnn_w2 = (jax.random.normal(next(ki), (H2, H1), jnp.float32)
              * init_std).astype(jnp.bfloat16)
    dnn_b2 = jax.random.normal(next(ki), (H2, 1), jnp.float32) * 0.01
    dnn_out_w = (jax.random.normal(next(ki), (num_classes, H2), jnp.float32)
                 * 0.1).astype(jnp.bfloat16)

    return dict(emb_tables=emb_tables,
                wide_w_sparse=wide_w_sparse, wide_w_dense=wide_w_dense,
                wide_b=wide_b,
                dnn_w1_emb=dnn_w1_emb, dnn_w1_dense=dnn_w1_dense, dnn_b1=dnn_b1,
                dnn_w2=dnn_w2, dnn_b2=dnn_b2,
                dnn_out_w=dnn_out_w)


if __name__ == "__main__":
    # Small synthetic config consistent with the module's constructor.
    sparse_feature_columns = [10, 20, 30, 40]   # 4 sparse features
    dense_feature_size = 4
    emb_size = 8
    hidden_dims = [32, 16]
    num_classes = 1
    batch = 8

    key = jax.random.PRNGKey(0)
    kp, ks, kd = jax.random.split(key, 3)

    params = init_params(kp, sparse_feature_columns, dense_feature_size,
                         emb_size, hidden_dims, num_classes)

    X_sparse = jnp.stack(
        [jax.random.randint(jax.random.fold_in(ks, i), (batch,), 0, v)
         for i, v in enumerate(sparse_feature_columns)], axis=1).astype(jnp.int32)
    X_dense = jax.random.normal(kd, (batch, dense_feature_size), jnp.float32)

    # TODO(synk): Dropout is treated as inference-mode identity (no RNG masking).
    out = widedeep_forward(X_sparse, X_dense, params)
    out = jax.block_until_ready(out)

    assert out.shape == (batch,)
    assert bool(jnp.all((out >= 0.0) & (out <= 1.0)))
    assert bool(jnp.all(jnp.isfinite(out)))
    print("KERNEL_OK")
</pallas_src>

<mosaic_0001>
module attributes {stable_mosaic.version = 11 : i64} {
  func.func @_widedeep_kernel(%arg0: i32, %arg1: memref<8x128xf32, #tpu.memory_space<vmem>>, %arg2: memref<16x128xbf16, #tpu.memory_space<vmem>>, %arg3: memref<32x128xbf16, #tpu.memory_space<vmem>>, %arg4: memref<1x8xf32, #tpu.memory_space<vmem>>, %arg5: memref<1x16xbf16, #tpu.memory_space<vmem>>, %arg6: memref<1x1xf32, #tpu.memory_space<vmem>>, %arg7: memref<32x32xbf16, #tpu.memory_space<vmem>>, %arg8: memref<32x16xbf16, #tpu.memory_space<vmem>>, %arg9: memref<32x1xf32, #tpu.memory_space<vmem>>, %arg10: memref<16x32xbf16, #tpu.memory_space<vmem>>, %arg11: memref<16x1xf32, #tpu.memory_space<vmem>>, %arg12: memref<1x16xbf16, #tpu.memory_space<vmem>>, %arg13: memref<1x128xf32, #tpu.memory_space<vmem>>) attributes {dimension_semantics = [#tpu.dimension_semantics<parallel>], iteration_bounds = array<i64: 1>, scalar_prefetch = 0 : i64, scratch_operands = 0 : i64, tpu.core_type = #tpu.core_type<tc>, window_params = [{transform_indices = @transform_0, window_bounds = array<i64: 8, 128>}, {transform_indices = @transform_1, window_bounds = array<i64: 16, 128>}, {transform_indices = @transform_2, window_bounds = array<i64: 32, 128>}, {pipeline_mode = #tpu.pipeline_mode<synchronous>, transform_indices = @transform_3, window_bounds = array<i64: 1, 8>}, {pipeline_mode = #tpu.pipeline_mode<synchronous>, transform_indices = @transform_4, window_bounds = array<i64: 1, 16>}, {pipeline_mode = #tpu.pipeline_mode<synchronous>, transform_indices = @transform_5, window_bounds = array<i64: 1, 1>}, {pipeline_mode = #tpu.pipeline_mode<synchronous>, transform_indices = @transform_6, window_bounds = array<i64: 32, 32>}, {pipeline_mode = #tpu.pipeline_mode<synchronous>, transform_indices = @transform_7, window_bounds = array<i64: 32, 16>}, {pipeline_mode = #tpu.pipeline_mode<synchronous>, transform_indices = @transform_8, window_bounds = array<i64: 32, 1>}, {pipeline_mode = #tpu.pipeline_mode<synchronous>, transform_indices = @transform_9, window_bounds = array<i64: 16, 32>}, {pipeline_mode = #tpu.pipeline_mode<synchronous>, transform_indices = @transform_10, window_bounds = array<i64: 16, 1>}, {pipeline_mode = #tpu.pipeline_mode<synchronous>, transform_indices = @transform_11, window_bounds = array<i64: 1, 16>}, {transform_indices = @transform_12, window_bounds = array<i64: 1, 128>}]} {
    %c0 = arith.constant 0 : index
    %c0_0 = arith.constant 0 : index
    %0 = vector.load %arg4[%c0, %c0_0] : memref<1x8xf32, #tpu.memory_space<vmem>>, vector<1x8xf32>
    %c0_1 = arith.constant 0 : index
    %c0_2 = arith.constant 0 : index
    %1 = vector.load %arg1[%c0_1, %c0_2] : memref<8x128xf32, #tpu.memory_space<vmem>>, vector<8x128xf32>
    %cst = arith.constant dense<0.000000e+00> : vector<1x128xf32>
    %2 = tpu.matmul %0, %1, %cst {dimension_numbers = #tpu.dot_dimension_numbers<[1], [0], [0], [1], [0, 0, 1, 1], [], []>} : vector<1x8xf32>, vector<8x128xf32>, vector<1x128xf32> -> vector<1x128xf32>
    %c0_3 = arith.constant 0 : index
    %c0_4 = arith.constant 0 : index
    %3 = vector.load %arg5[%c0_3, %c0_4] : memref<1x16xbf16, #tpu.memory_space<vmem>>, vector<1x16xbf16>
    %c0_5 = arith.constant 0 : index
    %c0_6 = arith.constant 0 : index
    %4 = vector.load %arg2[%c0_5, %c0_6] : memref<16x128xbf16, #tpu.memory_space<vmem>>, vector<16x128xbf16>
    %cst_7 = arith.constant dense<0.000000e+00> : vector<1x128xf32>
    %5 = tpu.matmul %3, %4, %cst_7 {dimension_numbers = #tpu.dot_dimension_numbers<[1], [0], [0], [1], [0, 0, 1, 1], [], []>} : vector<1x16xbf16>, vector<16x128xbf16>, vector<1x128xf32> -> vector<1x128xf32>
    %6 = arith.addf %2, %5 : vector<1x128xf32>
    %c0_8 = arith.constant 0 : index
    %c0_9 = arith.constant 0 : index
    %7 = vector.load %arg6[%c0_8, %c0_9] : memref<1x1xf32, #tpu.memory_space<vmem>>, vector<1x1xf32>
    %8 = vector.broadcast %7 : vector<1x1xf32> to vector<1x128xf32>
    %9 = arith.addf %6, %8 : vector<1x128xf32>
    %cst_10 = arith.constant 0.000000e+00 : f32
    %10 = vector.broadcast %cst_10 : f32 to vector<1x128xf32>
    %11 = arith.maximumf %9, %10 : vector<1x128xf32>
    %c0_11 = arith.constant 0 : index
    %c0_12 = arith.constant 0 : index
    %12 = vector.load %arg7[%c0_11, %c0_12] : memref<32x32xbf16, #tpu.memory_space<vmem>>, vector<32x32xbf16>
    %c0_13 = arith.constant 0 : index
    %c0_14 = arith.constant 0 : index
    %13 = vector.load %arg3[%c0_13, %c0_14] : memref<32x128xbf16, #tpu.memory_space<vmem>>, vector<32x128xbf16>
    %cst_15 = arith.constant dense<0.000000e+00> : vector<32x128xf32>
    %14 = tpu.matmul %12, %13, %cst_15 {dimension_numbers = #tpu.dot_dimension_numbers<[1], [0], [0], [1], [0, 0, 1, 1], [], []>} : vector<32x32xbf16>, vector<32x128xbf16>, vector<32x128xf32> -> vector<32x128xf32>
    %c0_16 = arith.constant 0 : index
    %c0_17 = arith.constant 0 : index
    %15 = vector.load %arg8[%c0_16, %c0_17] : memref<32x16xbf16, #tpu.memory_space<vmem>>, vector<32x16xbf16>
    %c0_18 = arith.constant 0 : index
    %c0_19 = arith.constant 0 : index
    %16 = vector.load %arg2[%c0_18, %c0_19] : memref<16x128xbf16, #tpu.memory_space<vmem>>, vector<16x128xbf16>
    %cst_20 = arith.constant dense<0.000000e+00> : vector<32x128xf32>
    %17 = tpu.matmul %15, %16, %cst_20 {dimension_numbers = #tpu.dot_dimension_numbers<[1], [0], [0], [1], [0, 0, 1, 1], [], []>} : vector<32x16xbf16>, vector<16x128xbf16>, vector<32x128xf32> -> vector<32x128xf32>
    %18 = arith.addf %14, %17 : vector<32x128xf32>
    %c0_21 = arith.constant 0 : index
    %c0_22 = arith.constant 0 : index
    %19 = vector.load %arg9[%c0_21, %c0_22] : memref<32x1xf32, #tpu.memory_space<vmem>>, vector<32x1xf32>
    %20 = vector.broadcast %19 : vector<32x1xf32> to vector<32x128xf32>
    %21 = arith.addf %18, %20 : vector<32x128xf32>
    %cst_23 = arith.constant 0.000000e+00 : f32
    %22 = vector.broadcast %cst_23 : f32 to vector<32x128xf32>
    %23 = arith.maximumf %21, %22 : vector<32x128xf32>
    %24 = arith.truncf %23 : vector<32x128xf32> to vector<32x128xbf16>
    %c0_24 = arith.constant 0 : index
    %c0_25 = arith.constant 0 : index
    %25 = vector.load %arg10[%c0_24, %c0_25] : memref<16x32xbf16, #tpu.memory_space<vmem>>, vector<16x32xbf16>
    %cst_26 = arith.constant dense<0.000000e+00> : vector<16x128xf32>
    %26 = tpu.matmul %25, %24, %cst_26 {dimension_numbers = #tpu.dot_dimension_numbers<[1], [0], [0], [1], [0, 0, 1, 1], [], []>} : vector<16x32xbf16>, vector<32x128xbf16>, vector<16x128xf32> -> vector<16x128xf32>
    %c0_27 = arith.constant 0 : index
    %c0_28 = arith.constant 0 : index
    %27 = vector.load %arg11[%c0_27, %c0_28] : memref<16x1xf32, #tpu.memory_space<vmem>>, vector<16x1xf32>
    %28 = vector.broadcast %27 : vector<16x1xf32> to vector<16x128xf32>
    %29 = arith.addf %26, %28 : vector<16x128xf32>
    %cst_29 = arith.constant 0.000000e+00 : f32
    %30 = vector.broadcast %cst_29 : f32 to vector<16x128xf32>
    %31 = arith.maximumf %29, %30 : vector<16x128xf32>
    %32 = arith.truncf %31 : vector<16x128xf32> to vector<16x128xbf16>
    %c0_30 = arith.constant 0 : index
    %c0_31 = arith.constant 0 : index
    %33 = vector.load %arg12[%c0_30, %c0_31] : memref<1x16xbf16, #tpu.memory_space<vmem>>, vector<1x16xbf16>
    %cst_32 = arith.constant dense<0.000000e+00> : vector<1x128xf32>
    %34 = tpu.matmul %33, %32, %cst_32 {dimension_numbers = #tpu.dot_dimension_numbers<[1], [0], [0], [1], [0, 0, 1, 1], [], []>} : vector<1x16xbf16>, vector<16x128xbf16>, vector<1x128xf32> -> vector<1x128xf32>
    %35 = arith.addf %11, %34 : vector<1x128xf32>
    %36 = arith.negf %35 : vector<1x128xf32>
    %37 = math.exp %36 : vector<1x128xf32>
    %cst_33 = arith.constant 1.000000e+00 : f32
    %38 = vector.broadcast %cst_33 : f32 to vector<1x128xf32>
    %39 = arith.addf %38, %37 : vector<1x128xf32>
    %40 = arith.divf %38, %39 : vector<1x128xf32>
    %c0_34 = arith.constant 0 : index
    %c0_35 = arith.constant 0 : index
    %41 = vector.load %arg13[%c0_34, %c0_35] : memref<1x128xf32, #tpu.memory_space<vmem>>, vector<1x128xf32>
    tpu.vector_store %arg13[%c0_34, %c0_35], %40 {strides = array<i32>} : memref<1x128xf32, #tpu.memory_space<vmem>>, vector<1x128xf32>,
    return
  }
  func.func @transform_0(%arg0: i32) -> (i32, i32) {
    %c0_i32 = arith.constant 0 : i32
    %c0_i32_0 = arith.constant 0 : i32
    return %c0_i32, %arg0 : i32, i32
  }
  func.func @transform_1(%arg0: i32) -> (i32, i32) {
    %c0_i32 = arith.constant 0 : i32
    %c0_i32_0 = arith.constant 0 : i32
    return %c0_i32, %arg0 : i32, i32
  }
  func.func @transform_2(%arg0: i32) -> (i32, i32) {
    %c0_i32 = arith.constant 0 : i32
    %c0_i32_0 = arith.constant 0 : i32
    return %c0_i32, %arg0 : i32, i32
  }
  func.func @transform_3(%arg0: i32) -> (i32, i32) {
    %c0_i32 = arith.constant 0 : i32
    %c0_i32_0 = arith.constant 0 : i32
    %c0_i32_1 = arith.constant 0 : i32
    return %c0_i32, %c0_i32_0 : i32, i32
  }
  func.func @transform_4(%arg0: i32) -> (i32, i32) {
    %c0_i32 = arith.constant 0 : i32
    %c0_i32_0 = arith.constant 0 : i32
    %c0_i32_1 = arith.constant 0 : i32
    return %c0_i32, %c0_i32_0 : i32, i32
  }
  func.func @transform_5(%arg0: i32) -> (i32, i32) {
    %c0_i32 = arith.constant 0 : i32
    %c0_i32_0 = arith.constant 0 : i32
    %c0_i32_1 = arith.constant 0 : i32
    return %c0_i32, %c0_i32_0 : i32, i32
  }
  func.func @transform_6(%arg0: i32) -> (i32, i32) {
    %c0_i32 = arith.constant 0 : i32
    %c0_i32_0 = arith.constant 0 : i32
    %c0_i32_1 = arith.constant 0 : i32
    return %c0_i32, %c0_i32_0 : i32, i32
  }
  func.func @transform_7(%arg0: i32) -> (i32, i32) {
    %c0_i32 = arith.constant 0 : i32
    %c0_i32_0 = arith.constant 0 : i32
    %c0_i32_1 = arith.constant 0 : i32
    return %c0_i32, %c0_i32_0 : i32, i32
  }
  func.func @transform_8(%arg0: i32) -> (i32, i32) {
    %c0_i32 = arith.constant 0 : i32
    %c0_i32_0 = arith.constant 0 : i32
    %c0_i32_1 = arith.constant 0 : i32
    return %c0_i32, %c0_i32_0 : i32, i32
  }
  func.func @transform_9(%arg0: i32) -> (i32, i32) {
    %c0_i32 = arith.constant 0 : i32
    %c0_i32_0 = arith.constant 0 : i32
    %c0_i32_1 = arith.constant 0 : i32
    return %c0_i32, %c0_i32_0 : i32, i32
  }
  func.func @transform_10(%arg0: i32) -> (i32, i32) {
    %c0_i32 = arith.constant 0 : i32
    %c0_i32_0 = arith.constant 0 : i32
    %c0_i32_1 = arith.constant 0 : i32
    return %c0_i32, %c0_i32_0 : i32, i32
  }
  func.func @transform_11(%arg0: i32) -> (i32, i32) {
    %c0_i32 = arith.constant 0 : i32
    %c0_i32_0 = arith.constant 0 : i32
    %c0_i32_1 = arith.constant 0 : i32
    return %c0_i32, %c0_i32_0 : i32, i32
  }
  func.func @transform_12(%arg0: i32) -> (i32, i32) {
    %c0_i32 = arith.constant 0 : i32
    %c0_i32_0 = arith.constant 0 : i32
    return %c0_i32, %arg0 : i32, i32
  }
}

</mosaic_0001>

<bundles_post_ra>
// kernel: tpu_custom_call.1
= control target key start
LH: loop header
LB: loop body
LE: loop exit
PB: predicated region body
PF: predicated region fallthrough
CT: control target
= control target key end

     0   :  { %s768_s0 = inlined_call_operand.vmem [shape: f32[8,128], index: 0, kind: input, shape index: {}]   ;;  %s769_s1 = inlined_call_operand.vmem [shape: bf16[16,128], index: 1, kind: input, shape index: {}]   ;;  %s770_s2 = inlined_call_operand.vmem [shape: bf16[32,128], index: 2, kind: input, shape index: {}]   ;;  %s771_s3 = inlined_call_operand.vmem [shape: f32[1,8], index: 3, kind: input, shape index: {}]   ;;  %s772_s4 = inlined_call_operand.vmem [shape: bf16[1,16], index: 4, kind: input, shape index: {}]   ;;  %s773_s5 = inlined_call_operand.<no memory space> [shape: f32[1,1], index: 5, kind: input, shape index: {}]   ;;  %s774_s6 = inlined_call_operand.vmem [shape: bf16[32,32], index: 6, kind: input, shape index: {}]   ;;  %s775_s7 = inlined_call_operand.vmem [shape: bf16[32,16], index: 7, kind: input, shape index: {}]   ;;  %s776_s8 = inlined_call_operand.vmem [shape: f32[32,1], index: 8, kind: input, shape index: {}]   ;;  %s777_s9 = inlined_call_operand.vmem [shape: bf16[16,32], index: 9, kind: input, shape index: {}]   ;;  %s778_s10 = inlined_call_operand.vmem [shape: f32[16,1], index: 10, kind: input, shape index: {}]   ;;  %s779_s11 = inlined_call_operand.vmem [shape: bf16[1,16], index: 11, kind: input, shape index: {}]   ;;  %s780_s12 = inlined_call_operand.hbm [shape: f32[1,128], index: 12, kind: output, shape index: {}]  }
   0x1   :  { %v17_v0 = vstv %s773_s5 }
   0x2   :  { %18 = vst [vmem:[#allocation2] sm:$0x1] %v17_v0 }
   0x3   :  { %v585_v1 = vld [vmem:[%s769_s1] sm:$0xff]   ;;  %v619_v2 = vmov 0.0   ;;  %vm100_vm0 = vcmask 64512   ;;  %vm56_vm1 = vcmask 130048   ;;  %vm620_vm2 = vmmov 0   ;;  %v586_v6 = vld [vmem:[%s770_s2 + $0x8] sm:$0xff]  }
   0x4   :  { %540 = vmatprep.subr.bf16.mxu0 %v619_v2  ;;  %546 = vmatprep.subr.mxu1 %v619_v2  ;;  %v46_v3 = vld [vmem:[%s768_s0] sm:$0xff]  ;;  %v588_v8 = vld [vmem:[%s775_s7 + $0x8] sm:$0xff]   ;;  %vm285_vm3 = vcmask 261120   ;;  %v621_v11 = vmov 0   ;;  %v343_v12 = vld [vmem:[%s776_s8 + $0x10] sm:$0xff] }
   0x5   :  { %v45_v4 = vld [vmem:[%s771_s3] sm:$0x1]  ;;  %541 = vmatpush3.bf16.msra.mxu0 %v585_v1  ;;  %547 = vmatpush3.msra.mxu1 %v46_v3  ;;  %v591_v14 = vld [vmem:[%s774_s6 + $0x8] sm:$0xff]   ;;  %v344_v15 = vld [vmem:[%s776_s8 + $0x18] sm:$0xff] }
   0x6   :  { %v47_v5 = vld [vmem:[%s772_s4] sm:$0x1]  ;;  %548 = vmatprep.mubr.msk.f32.mxu1 %vm620_vm2, %v619_v2  ;;  %551 = vmatprep.subr.bf16.mxu1 %v585_v1 }
   0x7   :  { %549 = vmatmul.mubr.msk.f32.vlgmr.msra.gmra.mxu1 %vm100_vm0, %v45_v4  ;;  %542 = vmatprep.mubr.msk.bf16.mxu0 %vm620_vm2, %v619_v2  ;;  %v587_v7 = vld [vmem:[%s775_s7] sm:$0xff]  }
   0x8   :  { %552 = vmatpush3.bf16.msra.mxu1 %v585_v1  ;;  %543 = vmatmul.mubr.msk.bf16.vlgmr.msra.gmra.mxu0 %vm56_vm1, %v47_v5  ;;  %v589_v9 = vld [vmem:[%s770_s2] sm:$0xff]  }
   0x9   :  { %557 = vmatprep.subr.bf16.mxu0 %v586_v6  ;;  %553 = vmatprep.mubr.msk.bf16.mxu1 %vm56_vm1, %v587_v7  ;;  %v590_v10 = vld [vmem:[%s774_s6] sm:$0xff]  }
   0xa   :  { %558 = vmatpush3.bf16.msra.mxu0 %v586_v6  ;;  %583 = vset.pattern.permute.xlu0 %v621_v11  ;;  %v341_v13 = vld [vmem:[%s776_s8] sm:$0xff] }
   0xb   :  { %554 = vmatmul.mubr.msk.bf16.vlgmr.msra.gmra.mxu1 %vm56_vm1, %v588_v8  ;;  %559 = vmatprep.subr.bf16.mxu0 %v589_v9 }
   0xc   :  { %561 = vmatprep.mubr.msk.bf16.mxu0 %vm285_vm3, %v590_v10  ;;  %357 = vperm.xlu0 %583, %v343_v12  }
   0xd   :  { %584 = vset.pattern.permute.xlu1 %v621_v11  ;;  %565 = vmatprep.subr.bf16.mxu1 %v619_v2 }
   0xe   :  { %560 = vmatpush3.bf16.msra.mxu0 %v589_v9  ;;  %347 = vperm.xlu1 %584, %v341_v13  }
   0xf   :  { %19 = vsyncpa [#allocation4], 0  ;;  %v342_v16 = vld [vmem:[%s776_s8 + $0x8] sm:$0xff]  ;;  %569 = vmatprep.mubr.msk.bf16.mxu1 %vm620_vm2, %v619_v2  ;;  %573 = vmatprep.subr.bf16.mxu0 %v619_v2  ;;  %v377_v17 = vld [vmem:[%s778_s10] sm:$0xff] }
  0x10   :  { %362 = vperm.xlu0 %583, %v344_v15   ;;  %v378_v18 = vld [vmem:[%s778_s10 + $0x8] sm:$0xff]  ;;  %v174_v19 = vld [vmem:[#allocation2] sm:$0x1] }
  0x11   :  { %562 = vmatmul.mubr.msk.bf16.vlgmr.msra.gmra.mxu0 %vm285_vm3, %v591_v14  ;;  %v592_v53 = vld [vmem:[%s777_s9] sm:$0xff]   ;;  %s622_s9 = smov [#allocation3]  }
  0x12   :  { %352 = vperm.xlu1 %584, %v342_v16   ;;  %575 = vmatprep.mubr.msk.bf16.mxu0 %vm620_vm2, %v619_v2  ;;  %v441_v1 = vld [vmem:[%s779_s11] sm:$0x1]  ;;  %s499_s11 = sshll.u32 %s622_s9, 4  ;;  %s500_s11 = int_to_ptr.vmem [resolvable:$true] %s499_s11 }
  0x13   :  { %s597_s1 = scalar_lea.vmem %s500_s11, 16  ;;  %s601_s30 = scalar_lea.vmem %s500_s11, 32 }
  0x14   :  { %381 = vperm.xlu0 %583, %v377_v17   ;;  %p598_p0 = scmp.ne.s32.totalorder %s500_s11, %s597_s1  ;;  %p602_p1 = scmp.lt.s32.totalorder %s500_s11, %s500_s11 }
  0x15   :  { %p603_p2 = scmp.lt.s32.totalorder %s601_s30, %s597_s1 }
  0x16   :  { %386 = vperm.xlu1 %584, %v378_v18  }
  0x17   :  { %p604_p3 = por %p603_p2, %p602_p1 }
  0x18   :  { %177 = vperm.xlu0 %583, %v174_v19  }
  0x19   :  { %p605_p4 = pnand %p604_p3, %p598_p0 }
  0x87   :  { %v358_v29 = vpop.permute.xlu0 %357 }
  0x89   :  { %v348_v31 = vpop.permute.xlu1 %347 }
  0x8b   :  { %v363_v36 = vpop.permute.xlu0 %362 }
  0x8d   :  { %v353_v44 = vpop.permute.xlu1 %352 }
  0x8f   :  { %v382_v55 = vpop.permute.xlu0 %381 }
  0x91   :  { %v387_v58 = vpop.permute.xlu1 %386 }
  0x93   :  { %v178_v5 = vpop.permute.xlu0 %177 }
  0xc7   :  { %v170_v20 = vpop.f32.mrf.mxu1 }
  0xc8   :  { %v94_v21 = vpop.f32.mrf.mxu0 }
  0xc9   :  { %v171_v22 = vadd.f32 %v170_v20, %v94_v21  ;;  %v550_v23 = vpop.f32.mrf.mxu1 }
  0xca   :  { %v544_v24 = vpop.f32.mrf.mxu0 }
  0xcb   :  { %v555_v25 = vpop.f32.mrf.mxu1 }
  0xcc   :  { %v97_v26 = vpop.f32.mrf.mxu0 }
  0xcd   :  { %v248_v28 = vpop.f32.mrf.mxu1 }
  0xce   :  { %v545_v27 = vpop.f32.mrf.mxu0 }
  0xcf   :  { %v556_v33 = vpop.f32.mrf.mxu1 }
  0xd1   :  { %v563_v30 = vpop.f32.mrf.mxu0  ;;  %v251_v40 = vpop.f32.mrf.mxu1 }
  0xd2   :  { %v335_v32 = vadd.f32 %v563_v30, %v555_v25 }
  0xd3   :  { %v326_v34 = vpop.f32.mrf.mxu0 }
  0xd4   :  { %v367_v37 = vadd.f32 %v358_v29, %v335_v32  ;;  %v327_v38 = vadd.f32 %v326_v34, %v248_v28 }
  0xd5   :  { %v564_v35 = vpop.f32.mrf.mxu0 }
  0xd6   :  { %v338_v39 = vadd.f32 %v564_v35, %v556_v33  ;;  %v371_v45 = vmax.f32 %v367_v37, 0.0  ;;  %v365_v46 = vadd.f32 %v348_v31, %v327_v38 }
  0xd7   :  { %v329_v41 = vpop.f32.mrf.mxu0 }
  0xd8   :  { %v368_v42 = vadd.f32 %v363_v36, %v338_v39  ;;  %v330_v43 = vadd.f32 %v329_v41, %v251_v40  ;;  %v369_v51 = vmax.f32 %v365_v46, 0.0 }
  0xda   :  { %v372_v47 = vmax.f32 %v368_v42, 0.0  ;;  %v366_v48 = vadd.f32 %v353_v44, %v330_v43 }
  0xdc   :  { %v374_v49 = vpack.c.bf16 %v372_v47, %v371_v45  ;;  %v370_v50 = vmax.f32 %v366_v48, 0.0 }
  0xde   :  { %566 = vmatpush3.bf16.msra.mxu1 %v374_v49  ;;  %v373_v52 = vpack.c.bf16 %v370_v50, %v369_v51 }
  0xdf   :  { %567 = vmatprep.subr.bf16.mxu1 %v619_v2  ;;  %v180_v2 = vlaneseq }
  0xe1   :  { %v181_v3 = vshrl.u32 %v180_v2, 7 }
  0xe2   :  { %568 = vmatpush3.bf16.msra.mxu1 %v373_v52 }
  0xe3   :  { %v182_v4 = vsub.s32 0, %v181_v3 }
  0xe5   :  { %570 = vmatmul.mubr.msk.bf16.vlgmr.msra.gmra.mxu1 %vm285_vm3, %v592_v53  ;;  %v183_v6 = vrot.slane %v178_v5, %v182_v4 }
  0xe7   :  { %v184_v7 = vadd.f32 %v183_v6, %v171_v22 }
  0xe9   :  { %v185_v8 = vmax.f32 %v184_v7, 0.0 }
 0x1a5   :  { %v431_v54 = vpop.f32.mrf.mxu1 }
 0x1a6   :  { %v432_v57 = vadd.f32 %v431_v54, %v382_v55 }
 0x1a7   :  { %v571_v56 = vpop.f32.mrf.mxu1 }
 0x1a8   :  { %v438_v62 = vmax.f32 %v432_v57, 0.0 }
 0x1a9   :  { %v434_v59 = vpop.f32.mrf.mxu1 }
 0x1aa   :  { %v435_v60 = vadd.f32 %v434_v59, %v387_v58 }
 0x1ab   :  { %v572_v61 = vpop.f32.mrf.mxu1 }
 0x1ac   :  { %v439_v63 = vmax.f32 %v435_v60, 0.0 }
 0x1ae   :  { %v440_v0 = vpack.c.bf16 %v439_v63, %v438_v62 }
 0x1b0   :  { %574 = vmatpush3.bf16.msra.mxu0 %v440_v0 }
 0x1b3   :  { %576 = vmatmul.mubr.msk.bf16.vlgmr.msra.gmra.mxu0 %vm56_vm1, %v441_v1 }
 0x273   :  { %v479_v9 = vpop.f32.mrf.mxu0 }
 0x274   :  { %v485_v10 = vadd.f32 %v479_v9, %v185_v8 }
 0x275   :  { %v577_v11 = vpop.f32.mrf.mxu0 }
 0x276   :  { %v523_v12 = vmul.f32 -1.442695, %v485_v10 }
 0x277   :  { %v482_v13 = vpop.f32.mrf.mxu0 }
 0x278   :  { %593 = vpow2.f32 %v523_v12 }
 0x279   :  { %v578_v14 = vpop.f32.mrf.mxu0 }
 0x285   :  { %v594_v15 = vpop.eup %593 }
 0x286   :  { %v489_v16 = vadd.f32 1.0, %v594_v15 }
 0x288   :  { %595 = vrcp.f32 %v489_v16 }
 0x295   :  { %v596_v17 = vpop.eup %595 }
 0x296   :  { %492 = vst [vmem:[#allocation3] sm:$0x1] %v596_v17 }
 0x297   :  { %608 = shalt.err (!%p605_p4)
}
 0x298   :  { %502 = dma.vmem_to_hbm [thread:$0]  %s500_s11, 16, %s780_s12, [#allocation4]  }
 0x299   :  { %617 = dma.done.wait [#allocation4], 16  }
 0x29a   :  { %618 = vsyncadd [#allocation4], 4294967280 }
 0x29b   :  { %506 = vsyncpa [#allocation4], 1 }

</bundles_post_ra>
